<compile_context>
chip_gen: v5e
topology: v5e:2x2
jax: 0.10.0
libtpu: 0.0.40
codegen_flags: <defaults>
</compile_context>

<pallas_src>
import functools

import jax
import jax.numpy as jnp
from jax.experimental import pallas as pl
from jax.experimental.pallas import tpu as pltpu

HIDDEN_SHAPE_FIRST = 64
HIDDEN_SHAPE_LSTM = 32
HIDDEN_SHAPE_SECOND = 32


def _fc_lstm_kernel(x_ref, len_ref,
                    w1_ref, b1_ref,
                    wg_ref, bg_ref, whh_ref,
                    wo_ref, bo_ref,
                    out_ref, *, T, B):
    H = HIDDEN_SHAPE_LSTM

    # Hoist all parameter loads out of the recurrence (read once).
    w1 = w1_ref[...]           # (F, 64)
    b1 = b1_ref[...]           # (1, 64)
    wg = wg_ref[...]           # (64, 4H)  = w2 @ wih, columns permuted to [i,f,o,g]
    bg = bg_ref[...]           # (1, 4H)   = b2 @ wih + bih + bhh, permuted
    whh = whh_ref[...]         # (H, 4H)   columns permuted to [i,f,o,g]
    lens = len_ref[...]        # (B, 1) int32

    # ---- batched input path for ALL timesteps (off the serial chain) ----
    x_all = x_ref[...]                                                  # (T*B, F)
    a1 = jnp.maximum(
        jnp.dot(x_all, w1, preferred_element_type=jnp.float32) + b1, 0.0)
    zi = jnp.dot(a1, wg, preferred_element_type=jnp.float32) + bg      # (T*B, 4H)

    # ---- serial recurrence: only the h-projection + gate math per step ----
    h = jnp.zeros((B, H), jnp.float32)
    c = jnp.zeros((B, H), jnp.float32)

    # T is static and tiny (fully unrolled); slices below are static and
    # sublane-tile aligned (B is a multiple of 8).
    for t in range(T):
        z_t = zi[t * B:(t + 1) * B, :]                                  # (B, 4H)
        gates = z_t + jnp.dot(h, whh, preferred_element_type=jnp.float32)
        sig = jax.nn.sigmoid(gates[:, :3 * H])                          # i | f | o
        g_g = jnp.tanh(gates[:, 3 * H:])
        i_g = sig[:, 0 * H:1 * H]
        f_g = sig[:, 1 * H:2 * H]
        o_g = sig[:, 2 * H:3 * H]

        c_new = f_g * c + i_g * g_g
        h_new = o_g * jnp.tanh(c_new)

        # packed-sequence semantics: only advance state while t < length[b]
        valid = t < lens                                                # (B, 1)
        h = jnp.where(valid, h_new, h)
        c = jnp.where(valid, c_new, c)

    # fc2 head (lane-padded to 128 cols -> unmasked vst), written to HBM once.
    out_ref[...] = (jnp.dot(h, wo_ref[...], preferred_element_type=jnp.float32)
                    + bo_ref[...])


def fc_lstm_forward(x, lengths, params):
    """x: (T, B, F) f32, lengths: (B,) int32. Returns (B, num_actions) f32."""
    T, B, F = x.shape
    (w1, b1, w2, b2, wih, bih, whh, bhh, wo, bo) = params
    A = wo.shape[1]
    H = HIDDEN_SHAPE_LSTM

    # ---- offline parameter folding (outside the kernel, once per call) ----
    # Fold fc's second Linear(64,32) into the LSTM input projection.
    w2ih = w2 @ wih                                   # (64, 4H)
    b_gate = b2 @ wih + bih + bhh                     # (1, 4H)

    # Permute gate columns [i,f,g,o] -> [i,f,o,g] so sigmoid covers one
    # contiguous 3H slab and tanh the trailing H slab.
    def _permute_gate_cols(w):
        return jnp.concatenate(
            [w[:, :2 * H], w[:, 3 * H:4 * H], w[:, 2 * H:3 * H]], axis=-1)

    wg_p = _permute_gate_cols(w2ih)
    whh_p = _permute_gate_cols(whh)
    bg_p = _permute_gate_cols(b_gate)

    # Lane-pad the output head to a full 128-lane slab (unmasked stores).
    A_pad = max(128, ((A + 127) // 128) * 128)
    wo_p = jnp.pad(wo, ((0, 0), (0, A_pad - A)))
    bo_p = jnp.pad(bo, ((0, 0), (0, A_pad - A)))

    # ---- pad batch to a sublane multiple of 8; padded rows have length 0 ----
    B_pad = max(8, ((B + 7) // 8) * 8)
    pad_b = B_pad - B
    x_p = jnp.pad(x, ((0, 0), (0, pad_b), (0, 0)))
    x_2d = x_p.reshape(T * B_pad, F)                  # wrapper-side, contiguous
    len2d = jnp.pad(lengths.astype(jnp.int32), (0, pad_b)).reshape(B_pad, 1)

    full = lambda shape: pl.BlockSpec(shape, lambda i: tuple(0 for _ in shape))

    out_pad = pl.pallas_call(
        functools.partial(_fc_lstm_kernel, T=T, B=B_pad),
        out_shape=jax.ShapeDtypeStruct((B_pad, A_pad), jnp.float32),
        grid_spec=pltpu.PrefetchScalarGridSpec(
            num_scalar_prefetch=0,
            grid=(1,),
            in_specs=[
                full((T * B_pad, F)),       # whole sequence resident in VMEM
                full((B_pad, 1)),           # lengths
                full(w1.shape), full(b1.shape),
                full(wg_p.shape), full(bg_p.shape),
                full(whh_p.shape),
                full(wo_p.shape), full(bo_p.shape),
            ],
            out_specs=full((B_pad, A_pad)),
        ),
        compiler_params=pltpu.CompilerParams(
            dimension_semantics=("arbitrary",)),
    )(x_2d, len2d, w1, b1, wg_p, bg_p, whh_p, wo_p, bo_p)

    return out_pad[:B, :A]


def init_params(key, input_shape, num_actions):
    ks = jax.random.split(key, 10)
    s = 0.1
    w1 = s * jax.random.normal(ks[0], (input_shape, HIDDEN_SHAPE_FIRST), jnp.float32)
    b1 = s * jax.random.normal(ks[1], (1, HIDDEN_SHAPE_FIRST), jnp.float32)
    w2 = s * jax.random.normal(ks[2], (HIDDEN_SHAPE_FIRST, HIDDEN_SHAPE_SECOND), jnp.float32)
    b2 = s * jax.random.normal(ks[3], (1, HIDDEN_SHAPE_SECOND), jnp.float32)
    # PyTorch LSTM stores weight_ih as (4H, in); we keep transposed (in, 4H), gate order i,f,g,o.
    wih = s * jax.random.normal(ks[4], (HIDDEN_SHAPE_SECOND, 4 * HIDDEN_SHAPE_LSTM), jnp.float32)
    bih = s * jax.random.normal(ks[5], (1, 4 * HIDDEN_SHAPE_LSTM), jnp.float32)
    whh = s * jax.random.normal(ks[6], (HIDDEN_SHAPE_LSTM, 4 * HIDDEN_SHAPE_LSTM), jnp.float32)
    bhh = s * jax.random.normal(ks[7], (1, 4 * HIDDEN_SHAPE_LSTM), jnp.float32)
    wo = s * jax.random.normal(ks[8], (HIDDEN_SHAPE_LSTM, num_actions), jnp.float32)
    bo = s * jax.random.normal(ks[9], (1, num_actions), jnp.float32)
    return (w1, b1, w2, b2, wih, bih, whh, bhh, wo, bo)


def ref_forward(x, lengths, params):
    """Pure-JAX reference with identical packed-sequence semantics (unfused math)."""
    (w1, b1, w2, b2, wih, bih, whh, bhh, wo, bo) = params
    H = HIDDEN_SHAPE_LSTM
    z = jnp.maximum(x @ w1 + b1, 0.0) @ w2 + b2            # (T, B, 32)
    B = x.shape[1]

    def step(carry, inp):
        h, c, t = carry
        z_t = inp
        gates = z_t @ wih + bih + h @ whh + bhh
        i_g = jax.nn.sigmoid(gates[:, 0 * H:1 * H])
        f_g = jax.nn.sigmoid(gates[:, 1 * H:2 * H])
        g_g = jnp.tanh(gates[:, 2 * H:3 * H])
        o_g = jax.nn.sigmoid(gates[:, 3 * H:4 * H])
        c_new = f_g * c + i_g * g_g
        h_new = o_g * jnp.tanh(c_new)
        valid = (t < lengths)[:, None]
        h = jnp.where(valid, h_new, h)
        c = jnp.where(valid, c_new, c)
        return (h, c, t + 1), None

    h0 = jnp.zeros((B, H), jnp.float32)
    c0 = jnp.zeros((B, H), jnp.float32)
    (h_n, _, _), _ = jax.lax.scan(step, (h0, c0, jnp.int32(0)), z)
    return h_n @ wo + bo


if __name__ == "__main__":
    key = jax.random.PRNGKey(0)
    T, B, F = 8, 2, 16
    num_actions = 5

    k_x, k_p = jax.random.split(key)
    x = jax.random.normal(k_x, (T, B, F), jnp.float32)
    lengths = jnp.array([8, 5], dtype=jnp.int32)   # variable-length "packed" sequences
    params = init_params(k_p, F, num_actions)

    out = fc_lstm_forward(x, lengths, params)
    out = jax.block_until_ready(out)

    ref = ref_forward(x, lengths, params)
    assert out.shape == (B, num_actions)
    assert jnp.allclose(out, ref, atol=1e-4, rtol=1e-4), (out, ref)

    print("KERNEL_OK")
</pallas_src>

<mosaic_0001>
module attributes {stable_mosaic.version = 11 : i64} {
  func.func @_fc_lstm_kernel(%arg0: i32, %arg1: memref<64x16xf32, #tpu.memory_space<vmem>>, %arg2: memref<8x1xi32, #tpu.memory_space<vmem>>, %arg3: memref<16x64xf32, #tpu.memory_space<vmem>>, %arg4: memref<1x64xf32, #tpu.memory_space<vmem>>, %arg5: memref<64x128xf32, #tpu.memory_space<vmem>>, %arg6: memref<1x128xf32, #tpu.memory_space<vmem>>, %arg7: memref<32x128xf32, #tpu.memory_space<vmem>>, %arg8: memref<32x128xf32, #tpu.memory_space<vmem>>, %arg9: memref<1x128xf32, #tpu.memory_space<vmem>>, %arg10: memref<8x128xf32, #tpu.memory_space<vmem>>) attributes {dimension_semantics = [#tpu.dimension_semantics<arbitrary>], iteration_bounds = array<i64: 1>, scalar_prefetch = 0 : i64, scratch_operands = 0 : i64, tpu.core_type = #tpu.core_type<tc>, window_params = [{pipeline_mode = #tpu.pipeline_mode<synchronous>, transform_indices = @transform_0, window_bounds = array<i64: 64, 16>}, {pipeline_mode = #tpu.pipeline_mode<synchronous>, transform_indices = @transform_1, window_bounds = array<i64: 8, 1>}, {pipeline_mode = #tpu.pipeline_mode<synchronous>, transform_indices = @transform_2, window_bounds = array<i64: 16, 64>}, {pipeline_mode = #tpu.pipeline_mode<synchronous>, transform_indices = @transform_3, window_bounds = array<i64: 1, 64>}, {pipeline_mode = #tpu.pipeline_mode<synchronous>, transform_indices = @transform_4, window_bounds = array<i64: 64, 128>}, {pipeline_mode = #tpu.pipeline_mode<synchronous>, transform_indices = @transform_5, window_bounds = array<i64: 1, 128>}, {pipeline_mode = #tpu.pipeline_mode<synchronous>, transform_indices = @transform_6, window_bounds = array<i64: 32, 128>}, {pipeline_mode = #tpu.pipeline_mode<synchronous>, transform_indices = @transform_7, window_bounds = array<i64: 32, 128>}, {pipeline_mode = #tpu.pipeline_mode<synchronous>, transform_indices = @transform_8, window_bounds = array<i64: 1, 128>}, {pipeline_mode = #tpu.pipeline_mode<synchronous>, transform_indices = @transform_9, window_bounds = array<i64: 8, 128>}]} {
    %c0 = arith.constant 0 : index
    %c0_0 = arith.constant 0 : index
    %0 = vector.load %arg3[%c0, %c0_0] : memref<16x64xf32, #tpu.memory_space<vmem>>, vector<16x64xf32>
    %c0_1 = arith.constant 0 : index
    %c0_2 = arith.constant 0 : index
    %1 = vector.load %arg4[%c0_1, %c0_2] : memref<1x64xf32, #tpu.memory_space<vmem>>, vector<1x64xf32>
    %c0_3 = arith.constant 0 : index
    %c0_4 = arith.constant 0 : index
    %2 = vector.load %arg5[%c0_3, %c0_4] : memref<64x128xf32, #tpu.memory_space<vmem>>, vector<64x128xf32>
    %c0_5 = arith.constant 0 : index
    %c0_6 = arith.constant 0 : index
    %3 = vector.load %arg6[%c0_5, %c0_6] : memref<1x128xf32, #tpu.memory_space<vmem>>, vector<1x128xf32>
    %c0_7 = arith.constant 0 : index
    %c0_8 = arith.constant 0 : index
    %4 = vector.load %arg7[%c0_7, %c0_8] : memref<32x128xf32, #tpu.memory_space<vmem>>, vector<32x128xf32>
    %c0_9 = arith.constant 0 : index
    %c0_10 = arith.constant 0 : index
    %5 = vector.load %arg2[%c0_9, %c0_10] : memref<8x1xi32, #tpu.memory_space<vmem>>, vector<8x1xi32>
    %c0_11 = arith.constant 0 : index
    %c0_12 = arith.constant 0 : index
    %6 = vector.load %arg1[%c0_11, %c0_12] : memref<64x16xf32, #tpu.memory_space<vmem>>, vector<64x16xf32>
    %cst = arith.constant dense<0.000000e+00> : vector<64x64xf32>
    %7 = tpu.matmul %6, %0, %cst {dimension_numbers = #tpu.dot_dimension_numbers<[1], [0], [0], [1], [0, 0, 1, 1], [], []>} : vector<64x16xf32>, vector<16x64xf32>, vector<64x64xf32> -> vector<64x64xf32>
    %8 = vector.broadcast %1 : vector<1x64xf32> to vector<64x64xf32>
    %9 = arith.addf %7, %8 : vector<64x64xf32>
    %cst_13 = arith.constant 0.000000e+00 : f32
    %10 = vector.broadcast %cst_13 : f32 to vector<64x64xf32>
    %11 = arith.maximumf %9, %10 : vector<64x64xf32>
    %cst_14 = arith.constant dense<0.000000e+00> : vector<64x128xf32>
    %12 = tpu.matmul %11, %2, %cst_14 {dimension_numbers = #tpu.dot_dimension_numbers<[1], [0], [0], [1], [0, 0, 1, 1], [], []>} : vector<64x64xf32>, vector<64x128xf32>, vector<64x128xf32> -> vector<64x128xf32>
    %13 = vector.broadcast %3 : vector<1x128xf32> to vector<64x128xf32>
    %14 = arith.addf %12, %13 : vector<64x128xf32>
    %cst_15 = arith.constant 0.000000e+00 : f32
    %15 = vector.broadcast %cst_15 : f32 to vector<8x32xf32>
    %cst_16 = arith.constant 0.000000e+00 : f32
    %16 = vector.broadcast %cst_16 : f32 to vector<8x32xf32>
    %17 = vector.extract_strided_slice %14 {offsets = [0, 0], sizes = [8, 128], strides = [1, 1]} : vector<64x128xf32> to vector<8x128xf32>
    %cst_17 = arith.constant dense<0.000000e+00> : vector<8x128xf32>
    %18 = tpu.matmul %15, %4, %cst_17 {dimension_numbers = #tpu.dot_dimension_numbers<[1], [0], [0], [1], [0, 0, 1, 1], [], []>} : vector<8x32xf32>, vector<32x128xf32>, vector<8x128xf32> -> vector<8x128xf32>
    %19 = arith.addf %17, %18 : vector<8x128xf32>
    %20 = vector.extract_strided_slice %19 {offsets = [0, 0], sizes = [8, 96], strides = [1, 1]} : vector<8x128xf32> to vector<8x96xf32>
    %21 = arith.negf %20 : vector<8x96xf32>
    %22 = math.exp %21 : vector<8x96xf32>
    %cst_18 = arith.constant 1.000000e+00 : f32
    %23 = vector.broadcast %cst_18 : f32 to vector<8x96xf32>
    %24 = arith.addf %23, %22 : vector<8x96xf32>
    %25 = arith.divf %23, %24 : vector<8x96xf32>
    %26 = vector.extract_strided_slice %19 {offsets = [0, 96], sizes = [8, 32], strides = [1, 1]} : vector<8x128xf32> to vector<8x32xf32>
    %27 = math.tanh %26 : vector<8x32xf32>
    %28 = vector.extract_strided_slice %25 {offsets = [0, 0], sizes = [8, 32], strides = [1, 1]} : vector<8x96xf32> to vector<8x32xf32>
    %29 = vector.extract_strided_slice %25 {offsets = [0, 32], sizes = [8, 32], strides = [1, 1]} : vector<8x96xf32> to vector<8x32xf32>
    %30 = vector.extract_strided_slice %25 {offsets = [0, 64], sizes = [8, 32], strides = [1, 1]} : vector<8x96xf32> to vector<8x32xf32>
    %31 = arith.mulf %29, %16 : vector<8x32xf32>
    %32 = arith.mulf %28, %27 : vector<8x32xf32>
    %33 = arith.addf %31, %32 : vector<8x32xf32>
    %34 = math.tanh %33 : vector<8x32xf32>
    %35 = arith.mulf %30, %34 : vector<8x32xf32>
    %c0_i32 = arith.constant 0 : i32
    %36 = vector.broadcast %c0_i32 : i32 to vector<8x1xi32>
    %37 = arith.cmpi sgt, %5, %36 : vector<8x1xi32>
    %38 = vector.shape_cast %37 : vector<8x1xi1> to vector<8x1xi1>
    %39 = vector.broadcast %38 : vector<8x1xi1> to vector<8x32xi1>
    %40 = arith.select %39, %35, %15 : vector<8x32xi1>, vector<8x32xf32>
    %41 = vector.shape_cast %37 : vector<8x1xi1> to vector<8x1xi1>
    %42 = vector.broadcast %41 : vector<8x1xi1> to vector<8x32xi1>
    %43 = arith.select %42, %33, %16 : vector<8x32xi1>, vector<8x32xf32>
    %44 = vector.extract_strided_slice %14 {offsets = [8, 0], sizes = [8, 128], strides = [1, 1]} : vector<64x128xf32> to vector<8x128xf32>
    %cst_19 = arith.constant dense<0.000000e+00> : vector<8x128xf32>
    %45 = tpu.matmul %40, %4, %cst_19 {dimension_numbers = #tpu.dot_dimension_numbers<[1], [0], [0], [1], [0, 0, 1, 1], [], []>} : vector<8x32xf32>, vector<32x128xf32>, vector<8x128xf32> -> vector<8x128xf32>
    %46 = arith.addf %44, %45 : vector<8x128xf32>
    %47 = vector.extract_strided_slice %46 {offsets = [0, 0], sizes = [8, 96], strides = [1, 1]} : vector<8x128xf32> to vector<8x96xf32>
    %48 = arith.negf %47 : vector<8x96xf32>
    %49 = math.exp %48 : vector<8x96xf32>
    %cst_20 = arith.constant 1.000000e+00 : f32
    %50 = vector.broadcast %cst_20 : f32 to vector<8x96xf32>
    %51 = arith.addf %50, %49 : vector<8x96xf32>
    %52 = arith.divf %50, %51 : vector<8x96xf32>
    %53 = vector.extract_strided_slice %46 {offsets = [0, 96], sizes = [8, 32], strides = [1, 1]} : vector<8x128xf32> to vector<8x32xf32>
    %54 = math.tanh %53 : vector<8x32xf32>
    %55 = vector.extract_strided_slice %52 {offsets = [0, 0], sizes = [8, 32], strides = [1, 1]} : vector<8x96xf32> to vector<8x32xf32>
    %56 = vector.extract_strided_slice %52 {offsets = [0, 32], sizes = [8, 32], strides = [1, 1]} : vector<8x96xf32> to vector<8x32xf32>
    %57 = vector.extract_strided_slice %52 {offsets = [0, 64], sizes = [8, 32], strides = [1, 1]} : vector<8x96xf32> to vector<8x32xf32>
    %58 = arith.mulf %56, %43 : vector<8x32xf32>
    %59 = arith.mulf %55, %54 : vector<8x32xf32>
    %60 = arith.addf %58, %59 : vector<8x32xf32>
    %61 = math.tanh %60 : vector<8x32xf32>
    %62 = arith.mulf %57, %61 : vector<8x32xf32>
    %c1_i32 = arith.constant 1 : i32
    %63 = vector.broadcast %c1_i32 : i32 to vector<8x1xi32>
    %64 = arith.cmpi sgt, %5, %63 : vector<8x1xi32>
    %65 = vector.shape_cast %64 : vector<8x1xi1> to vector<8x1xi1>
    %66 = vector.broadcast %65 : vector<8x1xi1> to vector<8x32xi1>
    %67 = arith.select %66, %62, %40 : vector<8x32xi1>, vector<8x32xf32>
    %68 = vector.shape_cast %64 : vector<8x1xi1> to vector<8x1xi1>
    %69 = vector.broadcast %68 : vector<8x1xi1> to vector<8x32xi1>
    %70 = arith.select %69, %60, %43 : vector<8x32xi1>, vector<8x32xf32>
    %71 = vector.extract_strided_slice %14 {offsets = [16, 0], sizes = [8, 128], strides = [1, 1]} : vector<64x128xf32> to vector<8x128xf32>
    %cst_21 = arith.constant dense<0.000000e+00> : vector<8x128xf32>
    %72 = tpu.matmul %67, %4, %cst_21 {dimension_numbers = #tpu.dot_dimension_numbers<[1], [0], [0], [1], [0, 0, 1, 1], [], []>} : vector<8x32xf32>, vector<32x128xf32>, vector<8x128xf32> -> vector<8x128xf32>
    %73 = arith.addf %71, %72 : vector<8x128xf32>
    %74 = vector.extract_strided_slice %73 {offsets = [0, 0], sizes = [8, 96], strides = [1, 1]} : vector<8x128xf32> to vector<8x96xf32>
    %75 = arith.negf %74 : vector<8x96xf32>
    %76 = math.exp %75 : vector<8x96xf32>
    %cst_22 = arith.constant 1.000000e+00 : f32
    %77 = vector.broadcast %cst_22 : f32 to vector<8x96xf32>
    %78 = arith.addf %77, %76 : vector<8x96xf32>
    %79 = arith.divf %77, %78 : vector<8x96xf32>
    %80 = vector.extract_strided_slice %73 {offsets = [0, 96], sizes = [8, 32], strides = [1, 1]} : vector<8x128xf32> to vector<8x32xf32>
    %81 = math.tanh %80 : vector<8x32xf32>
    %82 = vector.extract_strided_slice %79 {offsets = [0, 0], sizes = [8, 32], strides = [1, 1]} : vector<8x96xf32> to vector<8x32xf32>
    %83 = vector.extract_strided_slice %79 {offsets = [0, 32], sizes = [8, 32], strides = [1, 1]} : vector<8x96xf32> to vector<8x32xf32>
    %84 = vector.extract_strided_slice %79 {offsets = [0, 64], sizes = [8, 32], strides = [1, 1]} : vector<8x96xf32> to vector<8x32xf32>
    %85 = arith.mulf %83, %70 : vector<8x32xf32>
    %86 = arith.mulf %82, %81 : vector<8x32xf32>
    %87 = arith.addf %85, %86 : vector<8x32xf32>
    %88 = math.tanh %87 : vector<8x32xf32>
    %89 = arith.mulf %84, %88 : vector<8x32xf32>
    %c2_i32 = arith.constant 2 : i32
    %90 = vector.broadcast %c2_i32 : i32 to vector<8x1xi32>
    %91 = arith.cmpi sgt, %5, %90 : vector<8x1xi32>
    %92 = vector.shape_cast %91 : vector<8x1xi1> to vector<8x1xi1>
    %93 = vector.broadcast %92 : vector<8x1xi1> to vector<8x32xi1>
    %94 = arith.select %93, %89, %67 : vector<8x32xi1>, vector<8x32xf32>
    %95 = vector.shape_cast %91 : vector<8x1xi1> to vector<8x1xi1>
    %96 = vector.broadcast %95 : vector<8x1xi1> to vector<8x32xi1>
    %97 = arith.select %96, %87, %70 : vector<8x32xi1>, vector<8x32xf32>
    %98 = vector.extract_strided_slice %14 {offsets = [24, 0], sizes = [8, 128], strides = [1, 1]} : vector<64x128xf32> to vector<8x128xf32>
    %cst_23 = arith.constant dense<0.000000e+00> : vector<8x128xf32>
    %99 = tpu.matmul %94, %4, %cst_23 {dimension_numbers = #tpu.dot_dimension_numbers<[1], [0], [0], [1], [0, 0, 1, 1], [], []>} : vector<8x32xf32>, vector<32x128xf32>, vector<8x128xf32> -> vector<8x128xf32>
    %100 = arith.addf %98, %99 : vector<8x128xf32>
    %101 = vector.extract_strided_slice %100 {offsets = [0, 0], sizes = [8, 96], strides = [1, 1]} : vector<8x128xf32> to vector<8x96xf32>
    %102 = arith.negf %101 : vector<8x96xf32>
    %103 = math.exp %102 : vector<8x96xf32>
    %cst_24 = arith.constant 1.000000e+00 : f32
    %104 = vector.broadcast %cst_24 : f32 to vector<8x96xf32>
    %105 = arith.addf %104, %103 : vector<8x96xf32>
    %106 = arith.divf %104, %105 : vector<8x96xf32>
    %107 = vector.extract_strided_slice %100 {offsets = [0, 96], sizes = [8, 32], strides = [1, 1]} : vector<8x128xf32> to vector<8x32xf32>
    %108 = math.tanh %107 : vector<8x32xf32>
    %109 = vector.extract_strided_slice %106 {offsets = [0, 0], sizes = [8, 32], strides = [1, 1]} : vector<8x96xf32> to vector<8x32xf32>
    %110 = vector.extract_strided_slice %106 {offsets = [0, 32], sizes = [8, 32], strides = [1, 1]} : vector<8x96xf32> to vector<8x32xf32>
    %111 = vector.extract_strided_slice %106 {offsets = [0, 64], sizes = [8, 32], strides = [1, 1]} : vector<8x96xf32> to vector<8x32xf32>
    %112 = arith.mulf %110, %97 : vector<8x32xf32>
    %113 = arith.mulf %109, %108 : vector<8x32xf32>
    %114 = arith.addf %112, %113 : vector<8x32xf32>
    %115 = math.tanh %114 : vector<8x32xf32>
    %116 = arith.mulf %111, %115 : vector<8x32xf32>
    %c3_i32 = arith.constant 3 : i32
    %117 = vector.broadcast %c3_i32 : i32 to vector<8x1xi32>
    %118 = arith.cmpi sgt, %5, %117 : vector<8x1xi32>
    %119 = vector.shape_cast %118 : vector<8x1xi1> to vector<8x1xi1>
    %120 = vector.broadcast %119 : vector<8x1xi1> to vector<8x32xi1>
    %121 = arith.select %120, %116, %94 : vector<8x32xi1>, vector<8x32xf32>
    %122 = vector.shape_cast %118 : vector<8x1xi1> to vector<8x1xi1>
    %123 = vector.broadcast %122 : vector<8x1xi1> to vector<8x32xi1>
    %124 = arith.select %123, %114, %97 : vector<8x32xi1>, vector<8x32xf32>
    %125 = vector.extract_strided_slice %14 {offsets = [32, 0], sizes = [8, 128], strides = [1, 1]} : vector<64x128xf32> to vector<8x128xf32>
    %cst_25 = arith.constant dense<0.000000e+00> : vector<8x128xf32>
    %126 = tpu.matmul %121, %4, %cst_25 {dimension_numbers = #tpu.dot_dimension_numbers<[1], [0], [0], [1], [0, 0, 1, 1], [], []>} : vector<8x32xf32>, vector<32x128xf32>, vector<8x128xf32> -> vector<8x128xf32>
    %127 = arith.addf %125, %126 : vector<8x128xf32>
    %128 = vector.extract_strided_slice %127 {offsets = [0, 0], sizes = [8, 96], strides = [1, 1]} : vector<8x128xf32> to vector<8x96xf32>
    %129 = arith.negf %128 : vector<8x96xf32>
    %130 = math.exp %129 : vector<8x96xf32>
    %cst_26 = arith.constant 1.000000e+00 : f32
    %131 = vector.broadcast %cst_26 : f32 to vector<8x96xf32>
    %132 = arith.addf %131, %130 : vector<8x96xf32>
    %133 = arith.divf %131, %132 : vector<8x96xf32>
    %134 = vector.extract_strided_slice %127 {offsets = [0, 96], sizes = [8, 32], strides = [1, 1]} : vector<8x128xf32> to vector<8x32xf32>
    %135 = math.tanh %134 : vector<8x32xf32>
    %136 = vector.extract_strided_slice %133 {offsets = [0, 0], sizes = [8, 32], strides = [1, 1]} : vector<8x96xf32> to vector<8x32xf32>
    %137 = vector.extract_strided_slice %133 {offsets = [0, 32], sizes = [8, 32], strides = [1, 1]} : vector<8x96xf32> to vector<8x32xf32>
    %138 = vector.extract_strided_slice %133 {offsets = [0, 64], sizes = [8, 32], strides = [1, 1]} : vector<8x96xf32> to vector<8x32xf32>
    %139 = arith.mulf %137, %124 : vector<8x32xf32>
    %140 = arith.mulf %136, %135 : vector<8x32xf32>
    %141 = arith.addf %139, %140 : vector<8x32xf32>
    %142 = math.tanh %141 : vector<8x32xf32>
    %143 = arith.mulf %138, %142 : vector<8x32xf32>
    %c4_i32 = arith.constant 4 : i32
    %144 = vector.broadcast %c4_i32 : i32 to vector<8x1xi32>
    %145 = arith.cmpi sgt, %5, %144 : vector<8x1xi32>
    %146 = vector.shape_cast %145 : vector<8x1xi1> to vector<8x1xi1>
    %147 = vector.broadcast %146 : vector<8x1xi1> to vector<8x32xi1>
    %148 = arith.select %147, %143, %121 : vector<8x32xi1>, vector<8x32xf32>
    %149 = vector.shape_cast %145 : vector<8x1xi1> to vector<8x1xi1>
    %150 = vector.broadcast %149 : vector<8x1xi1> to vector<8x32xi1>
    %151 = arith.select %150, %141, %124 : vector<8x32xi1>, vector<8x32xf32>
    %152 = vector.extract_strided_slice %14 {offsets = [40, 0], sizes = [8, 128], strides = [1, 1]} : vector<64x128xf32> to vector<8x128xf32>
    %cst_27 = arith.constant dense<0.000000e+00> : vector<8x128xf32>
    %153 = tpu.matmul %148, %4, %cst_27 {dimension_numbers = #tpu.dot_dimension_numbers<[1], [0], [0], [1], [0, 0, 1, 1], [], []>} : vector<8x32xf32>, vector<32x128xf32>, vector<8x128xf32> -> vector<8x128xf32>
    %154 = arith.addf %152, %153 : vector<8x128xf32>
    %155 = vector.extract_strided_slice %154 {offsets = [0, 0], sizes = [8, 96], strides = [1, 1]} : vector<8x128xf32> to vector<8x96xf32>
    %156 = arith.negf %155 : vector<8x96xf32>
    %157 = math.exp %156 : vector<8x96xf32>
    %cst_28 = arith.constant 1.000000e+00 : f32
    %158 = vector.broadcast %cst_28 : f32 to vector<8x96xf32>
    %159 = arith.addf %158, %157 : vector<8x96xf32>
    %160 = arith.divf %158, %159 : vector<8x96xf32>
    %161 = vector.extract_strided_slice %154 {offsets = [0, 96], sizes = [8, 32], strides = [1, 1]} : vector<8x128xf32> to vector<8x32xf32>
    %162 = math.tanh %161 : vector<8x32xf32>
    %163 = vector.extract_strided_slice %160 {offsets = [0, 0], sizes = [8, 32], strides = [1, 1]} : vector<8x96xf32> to vector<8x32xf32>
    %164 = vector.extract_strided_slice %160 {offsets = [0, 32], sizes = [8, 32], strides = [1, 1]} : vector<8x96xf32> to vector<8x32xf32>
    %165 = vector.extract_strided_slice %160 {offsets = [0, 64], sizes = [8, 32], strides = [1, 1]} : vector<8x96xf32> to vector<8x32xf32>
    %166 = arith.mulf %164, %151 : vector<8x32xf32>
    %167 = arith.mulf %163, %162 : vector<8x32xf32>
    %168 = arith.addf %166, %167 : vector<8x32xf32>
    %169 = math.tanh %168 : vector<8x32xf32>
    %170 = arith.mulf %165, %169 : vector<8x32xf32>
    %c5_i32 = arith.constant 5 : i32
    %171 = vector.broadcast %c5_i32 : i32 to vector<8x1xi32>
    %172 = arith.cmpi sgt, %5, %171 : vector<8x1xi32>
    %173 = vector.shape_cast %172 : vector<8x1xi1> to vector<8x1xi1>
    %174 = vector.broadcast %173 : vector<8x1xi1> to vector<8x32xi1>
    %175 = arith.select %174, %170, %148 : vector<8x32xi1>, vector<8x32xf32>
    %176 = vector.shape_cast %172 : vector<8x1xi1> to vector<8x1xi1>
    %177 = vector.broadcast %176 : vector<8x1xi1> to vector<8x32xi1>
    %178 = arith.select %177, %168, %151 : vector<8x32xi1>, vector<8x32xf32>
    %179 = vector.extract_strided_slice %14 {offsets = [48, 0], sizes = [8, 128], strides = [1, 1]} : vector<64x128xf32> to vector<8x128xf32>
    %cst_29 = arith.constant dense<0.000000e+00> : vector<8x128xf32>
    %180 = tpu.matmul %175, %4, %cst_29 {dimension_numbers = #tpu.dot_dimension_numbers<[1], [0], [0], [1], [0, 0, 1, 1], [], []>} : vector<8x32xf32>, vector<32x128xf32>, vector<8x128xf32> -> vector<8x128xf32>
    %181 = arith.addf %179, %180 : vector<8x128xf32>
    %182 = vector.extract_strided_slice %181 {offsets = [0, 0], sizes = [8, 96], strides = [1, 1]} : vector<8x128xf32> to vector<8x96xf32>
    %183 = arith.negf %182 : vector<8x96xf32>
    %184 = math.exp %183 : vector<8x96xf32>
    %cst_30 = arith.constant 1.000000e+00 : f32
    %185 = vector.broadcast %cst_30 : f32 to vector<8x96xf32>
    %186 = arith.addf %185, %184 : vector<8x96xf32>
    %187 = arith.divf %185, %186 : vector<8x96xf32>
    %188 = vector.extract_strided_slice %181 {offsets = [0, 96], sizes = [8, 32], strides = [1, 1]} : vector<8x128xf32> to vector<8x32xf32>
    %189 = math.tanh %188 : vector<8x32xf32>
    %190 = vector.extract_strided_slice %187 {offsets = [0, 0], sizes = [8, 32], strides = [1, 1]} : vector<8x96xf32> to vector<8x32xf32>
    %191 = vector.extract_strided_slice %187 {offsets = [0, 32], sizes = [8, 32], strides = [1, 1]} : vector<8x96xf32> to vector<8x32xf32>
    %192 = vector.extract_strided_slice %187 {offsets = [0, 64], sizes = [8, 32], strides = [1, 1]} : vector<8x96xf32> to vector<8x32xf32>
    %193 = arith.mulf %191, %178 : vector<8x32xf32>
    %194 = arith.mulf %190, %189 : vector<8x32xf32>
    %195 = arith.addf %193, %194 : vector<8x32xf32>
    %196 = math.tanh %195 : vector<8x32xf32>
    %197 = arith.mulf %192, %196 : vector<8x32xf32>
    %c6_i32 = arith.constant 6 : i32
    %198 = vector.broadcast %c6_i32 : i32 to vector<8x1xi32>
    %199 = arith.cmpi sgt, %5, %198 : vector<8x1xi32>
    %200 = vector.shape_cast %199 : vector<8x1xi1> to vector<8x1xi1>
    %201 = vector.broadcast %200 : vector<8x1xi1> to vector<8x32xi1>
    %202 = arith.select %201, %197, %175 : vector<8x32xi1>, vector<8x32xf32>
    %203 = vector.shape_cast %199 : vector<8x1xi1> to vector<8x1xi1>
    %204 = vector.broadcast %203 : vector<8x1xi1> to vector<8x32xi1>
    %205 = arith.select %204, %195, %178 : vector<8x32xi1>, vector<8x32xf32>
    %206 = vector.extract_strided_slice %14 {offsets = [56, 0], sizes = [8, 128], strides = [1, 1]} : vector<64x128xf32> to vector<8x128xf32>
    %cst_31 = arith.constant dense<0.000000e+00> : vector<8x128xf32>
    %207 = tpu.matmul %202, %4, %cst_31 {dimension_numbers = #tpu.dot_dimension_numbers<[1], [0], [0], [1], [0, 0, 1, 1], [], []>} : vector<8x32xf32>, vector<32x128xf32>, vector<8x128xf32> -> vector<8x128xf32>
    %208 = arith.addf %206, %207 : vector<8x128xf32>
    %209 = vector.extract_strided_slice %208 {offsets = [0, 0], sizes = [8, 96], strides = [1, 1]} : vector<8x128xf32> to vector<8x96xf32>
    %210 = arith.negf %209 : vector<8x96xf32>
    %211 = math.exp %210 : vector<8x96xf32>
    %cst_32 = arith.constant 1.000000e+00 : f32
    %212 = vector.broadcast %cst_32 : f32 to vector<8x96xf32>
    %213 = arith.addf %212, %211 : vector<8x96xf32>
    %214 = arith.divf %212, %213 : vector<8x96xf32>
    %215 = vector.extract_strided_slice %208 {offsets = [0, 96], sizes = [8, 32], strides = [1, 1]} : vector<8x128xf32> to vector<8x32xf32>
    %216 = math.tanh %215 : vector<8x32xf32>
    %217 = vector.extract_strided_slice %214 {offsets = [0, 0], sizes = [8, 32], strides = [1, 1]} : vector<8x96xf32> to vector<8x32xf32>
    %218 = vector.extract_strided_slice %214 {offsets = [0, 32], sizes = [8, 32], strides = [1, 1]} : vector<8x96xf32> to vector<8x32xf32>
    %219 = vector.extract_strided_slice %214 {offsets = [0, 64], sizes = [8, 32], strides = [1, 1]} : vector<8x96xf32> to vector<8x32xf32>
    %220 = arith.mulf %218, %205 : vector<8x32xf32>
    %221 = arith.mulf %217, %216 : vector<8x32xf32>
    %222 = arith.addf %220, %221 : vector<8x32xf32>
    %223 = math.tanh %222 : vector<8x32xf32>
    %224 = arith.mulf %219, %223 : vector<8x32xf32>
    %c7_i32 = arith.constant 7 : i32
    %225 = vector.broadcast %c7_i32 : i32 to vector<8x1xi32>
    %226 = arith.cmpi sgt, %5, %225 : vector<8x1xi32>
    %227 = vector.shape_cast %226 : vector<8x1xi1> to vector<8x1xi1>
    %228 = vector.broadcast %227 : vector<8x1xi1> to vector<8x32xi1>
    %229 = arith.select %228, %224, %202 : vector<8x32xi1>, vector<8x32xf32>
    %c0_33 = arith.constant 0 : index
    %c0_34 = arith.constant 0 : index
    %230 = vector.load %arg8[%c0_33, %c0_34] : memref<32x128xf32, #tpu.memory_space<vmem>>, vector<32x128xf32>
    %cst_35 = arith.constant dense<0.000000e+00> : vector<8x128xf32>
    %231 = tpu.matmul %229, %230, %cst_35 {dimension_numbers = #tpu.dot_dimension_numbers<[1], [0], [0], [1], [0, 0, 1, 1], [], []>} : vector<8x32xf32>, vector<32x128xf32>, vector<8x128xf32> -> vector<8x128xf32>
    %c0_36 = arith.constant 0 : index
    %c0_37 = arith.constant 0 : index
    %232 = vector.load %arg9[%c0_36, %c0_37] : memref<1x128xf32, #tpu.memory_space<vmem>>, vector<1x128xf32>
    %233 = vector.broadcast %232 : vector<1x128xf32> to vector<8x128xf32>
    %234 = arith.addf %231, %233 : vector<8x128xf32>
    %c0_38 = arith.constant 0 : index
    %c0_39 = arith.constant 0 : index
    %235 = vector.load %arg10[%c0_38, %c0_39] : memref<8x128xf32, #tpu.memory_space<vmem>>, vector<8x128xf32>
    tpu.vector_store %arg10[%c0_38, %c0_39], %234 {strides = array<i32>} : memref<8x128xf32, #tpu.memory_space<vmem>>, vector<8x128xf32>,
    return
  }
  func.func @transform_0(%arg0: i32) -> (i32, i32) {
    %c0_i32 = arith.constant 0 : i32
    %c0_i32_0 = arith.constant 0 : i32
    %c0_i32_1 = arith.constant 0 : i32
    return %c0_i32, %c0_i32_0 : i32, i32
  }
  func.func @transform_1(%arg0: i32) -> (i32, i32) {
    %c0_i32 = arith.constant 0 : i32
    %c0_i32_0 = arith.constant 0 : i32
    %c0_i32_1 = arith.constant 0 : i32
    return %c0_i32, %c0_i32_0 : i32, i32
  }
  func.func @transform_2(%arg0: i32) -> (i32, i32) {
    %c0_i32 = arith.constant 0 : i32
    %c0_i32_0 = arith.constant 0 : i32
    %c0_i32_1 = arith.constant 0 : i32
    return %c0_i32, %c0_i32_0 : i32, i32
  }
  func.func @transform_3(%arg0: i32) -> (i32, i32) {
    %c0_i32 = arith.constant 0 : i32
    %c0_i32_0 = arith.constant 0 : i32
    %c0_i32_1 = arith.constant 0 : i32
    return %c0_i32, %c0_i32_0 : i32, i32
  }
  func.func @transform_4(%arg0: i32) -> (i32, i32) {
    %c0_i32 = arith.constant 0 : i32
    %c0_i32_0 = arith.constant 0 : i32
    %c0_i32_1 = arith.constant 0 : i32
    return %c0_i32, %c0_i32_0 : i32, i32
  }
  func.func @transform_5(%arg0: i32) -> (i32, i32) {
    %c0_i32 = arith.constant 0 : i32
    %c0_i32_0 = arith.constant 0 : i32
    %c0_i32_1 = arith.constant 0 : i32
    return %c0_i32, %c0_i32_0 : i32, i32
  }
  func.func @transform_6(%arg0: i32) -> (i32, i32) {
    %c0_i32 = arith.constant 0 : i32
    %c0_i32_0 = arith.constant 0 : i32
    %c0_i32_1 = arith.constant 0 : i32
    return %c0_i32, %c0_i32_0 : i32, i32
  }
  func.func @transform_7(%arg0: i32) -> (i32, i32) {
    %c0_i32 = arith.constant 0 : i32
    %c0_i32_0 = arith.constant 0 : i32
    %c0_i32_1 = arith.constant 0 : i32
    return %c0_i32, %c0_i32_0 : i32, i32
  }
  func.func @transform_8(%arg0: i32) -> (i32, i32) {
    %c0_i32 = arith.constant 0 : i32
    %c0_i32_0 = arith.constant 0 : i32
    %c0_i32_1 = arith.constant 0 : i32
    return %c0_i32, %c0_i32_0 : i32, i32
  }
  func.func @transform_9(%arg0: i32) -> (i32, i32) {
    %c0_i32 = arith.constant 0 : i32
    %c0_i32_0 = arith.constant 0 : i32
    %c0_i32_1 = arith.constant 0 : i32
    return %c0_i32, %c0_i32_0 : i32, i32
  }
}

</mosaic_0001>

<bundles_post_ra>
// kernel: tpu_custom_call.1
= control target key start
LH: loop header
LB: loop body
LE: loop exit
PB: predicated region body
PF: predicated region fallthrough
CT: control target
= control target key end

     0   :  { %14 = vsyncpa [#allocation3], 0  ;;  %s1334_s0 = inlined_call_operand.vmem [shape: f32[64,16], index: 0, kind: input, shape index: {}]   ;;  %s1335_s1 = inlined_call_operand.vmem [shape: s32[8,1], index: 1, kind: input, shape index: {}]   ;;  %s1336_s2 = inlined_call_operand.vmem [shape: f32[16,64], index: 2, kind: input, shape index: {}]   ;;  %s1337_s3 = inlined_call_operand.vmem [shape: f32[1,64], index: 3, kind: input, shape index: {}]   ;;  %s1338_s4 = inlined_call_operand.vmem [shape: f32[64,128], index: 4, kind: input, shape index: {}]   ;;  %s1339_s5 = inlined_call_operand.vmem [shape: f32[1,128], index: 5, kind: input, shape index: {}]   ;;  %s1340_s6 = inlined_call_operand.hbm [shape: f32[32,128], index: 6, kind: input, shape index: {}]   ;;  %s1341_s7 = inlined_call_operand.hbm [shape: f32[32,128], index: 7, kind: input, shape index: {}]   ;;  %s1342_s8 = inlined_call_operand.vmem [shape: f32[1,128], index: 8, kind: input, shape index: {}]   ;;  %s1343_s9 = inlined_call_operand.hbm [shape: f32[8,128], index: 9, kind: output, shape index: {}]  }
   0x1   :  { %15 = vsyncpa [#allocation6], 0 }
   0x2   :  { %16 = vsyncpa [#allocation4], 0  ;;  %s33_s11 = sshll.u32 %s1340_s6, 4  ;;  %s1053_s12 = smov [#allocation2]   ;;  %s34_s11 = int_to_ptr.hbm [resolvable:$true] %s33_s11 }
   0x3   :  { %s35_s13 = sshll.u32 %s1053_s12, 4  ;;  %s46_s16 = sshll.u32 %s1341_s7, 4  ;;  %s36_s13 = int_to_ptr.vmem [resolvable:$true] %s35_s13  ;;  %s47_s16 = int_to_ptr.hbm [resolvable:$true] %s46_s16 }
   0x4   :  { %s1054_s17 = smov 128   ;;  %s1055_s18 = smov 8  }
   0x5   :  { %41 = dma.hbm_to_vmem [thread:$0]  %s34_s11, 512, %s36_s13, [#allocation3], %s1054_s17, %s1054_s17, %s1055_s18  }
   0x6   :  { %s1056_s19 = smov [#allocation5]  }
   0x7   :  { %s48_s20 = sshll.u32 %s1056_s19, 4  ;;  %s49_s20 = int_to_ptr.vmem [resolvable:$true] %s48_s20 }
   0x8   :  { %54 = dma.hbm_to_vmem [thread:$0]  %s47_s16, 512, %s49_s20, [#allocation6], %s1054_s17, %s1054_s17, %s1055_s18  }
   0x9   :  { %1047 = dma.done.wait [#allocation3], 512  }
   0xa   :  { %1048 = vsyncadd [#allocation3], 4294966784 }
   0xb   :  { %1049 = dma.done.wait [#allocation6], 512  }
   0xc   :  { %1050 = vsyncadd [#allocation6], 4294966784  ;;  %v66_v0 = vld [vmem:[%s1336_s2 + $0x8] sm:$0xff]  ;;  %v65_v1 = vld [vmem:[%s1336_s2] sm:$0xff]  ;;  %vm93_vm0 = vcmask 130048   ;;  %v1057_v20 = vmov 0.0  }
   0xd   :  { %132 = vmatpush.msra.mxu0 %v66_v0  ;;  %v82_v2 = vld [vmem:[%s1334_s0] sm:$0xff]  ;;  %886 = vmatpush.msra.mxu2 %v66_v0  ;;  %v83_v3 = vld [vmem:[%s1334_s0 + $0x8] sm:$0xff]  ;;  %v75_v4 = vld [vmem:[%s1338_s4 + $0x38] sm:$0xff]  ;;  %vm170_vm1 = vcmask 523264   ;;  %s1058_s10 = smov 32   ;;  %s1060_s12 = smov 64  }
   0xe   :  { %203 = vmatpush.msra.mxu1 %v75_v4  ;;  %888 = vmatpush.msra.mxu3 %v75_v4  ;;  %v84_v5 = vld [vmem:[%s1334_s0 + $0x10] sm:$0xff]  ;;  %v89_v7 = vld [vmem:[%s1334_s0 + $0x38] sm:$0xff]  ;;  %v73_v9 = vld [vmem:[%s1338_s4 + $0x28] sm:$0xff]  ;;  %vm236_vm8 = vcmask 261120   ;;  %s1061_s14 = smov [#allocation7]   ;;  %s843_s18 = sshll.u32 %s1343_s9, 4  ;;  %s844_s18 = int_to_ptr.hbm [resolvable:$true] %s843_s18 }
   0xf   :  { %133 = vmatpush.msra.mxu0 %v65_v1  ;;  %887 = vmatpush.msra.mxu2 %v65_v1  ;;  %v74_v6 = vld [vmem:[%s1338_s4 + $0x30] sm:$0xff]  ;;  %v1145_v8 = vld [vmem:[#allocation2 + $0x18] sm:$0xff]  ;;  %v72_v11 = vld [vmem:[%s1338_s4 + $0x20] sm:$0xff]  ;;  %s841_s15 = sshll.u32 %s1061_s14, 4  ;;  %s842_s15 = int_to_ptr.vmem [resolvable:$true] %s841_s15 }
  0x10   :  { %854 = vmatmul.msk.f32.vlgmr.msra.gmra.mxu0 %vm93_vm0, %v82_v2  ;;  %204 = vmatpush.msra.mxu1 %v74_v6  ;;  %v1151_v10 = vld [vmem:[#allocation2 + $0x10] sm:$0xff]  ;;  %v1157_v12 = vld [vmem:[#allocation2 + $0x8] sm:$0xff]  ;;  %v71_v13 = vld [vmem:[%s1338_s4 + $0x18] sm:$0xff] }
  0x11   :  { %861 = vmatmul.msk.f32.vlgmr.msra.gmra.mxu2 %vm93_vm0, %v89_v7  ;;  %889 = vmatpush.msra.mxu3 %v74_v6  ;;  %v85_v14 = vld [vmem:[%s1334_s0 + $0x18] sm:$0xff]  ;;  %v1166_v15 = vld [vmem:[#allocation2] sm:$0xff]  ;;  %v87_v17 = vld [vmem:[%s1334_s0 + $0x28] sm:$0xff] }
  0x12   :  { %252 = vmatpush.msrb.mxu2 %v1145_v8  ;;  %205 = vmatpush.msra.mxu1 %v73_v9  ;;  %v86_v16 = vld [vmem:[%s1334_s0 + $0x20] sm:$0xff]  ;;  %v88_v18 = vld [vmem:[%s1334_s0 + $0x30] sm:$0xff]  ;;  %v69_v21 = vld [vmem:[%s1338_s4 + $0x8] sm:$0xff] }
  0x13   :  { %890 = vmatpush.msra.mxu3 %v73_v9  ;;  %v70_v19 = vld [vmem:[%s1338_s4 + $0x10] sm:$0xff]  ;;  %v68_v22 = vld [vmem:[%s1338_s4] sm:$0xff] }
  0x14   :  { %253 = vmatpush.msrb.mxu2 %v1151_v10  ;;  %206 = vmatpush.msra.mxu1 %v72_v11  ;;  %v908_v23 = vld [vmem:[%s1337_s3] ss:$0 sm:$0xff] }
  0x15   :  { %891 = vmatpush.msra.mxu3 %v72_v11  ;;  %v1222_v48 = vld [vmem:[%s1339_s5] ss:$0 sm:$0xff] }
  0x16   :  { %254 = vmatpush.msrb.mxu2 %v1157_v12  ;;  %207 = vmatpush.msra.mxu1 %v71_v13 }
  0x17   :  { %892 = vmatpush.msra.mxu3 %v71_v13  ;;  %v1233_v13 = vld [vmem:[%s1335_s1] sm:$0xff] }
  0x18   :  { %855 = vmatmul.msk.f32.gmra.mxu0 %vm93_vm0, %v83_v3  ;;  %255 = vmatpush.msrb.mxu2 %v1166_v15  ;;  %vm298_vm6 = vcmp.gt.s32.totalorder %v1233_v13, 0  ;;  %vm369_vm9 = vcmp.gt.s32.totalorder %v1233_v13, 1  ;;  %vm440_vm15 = vcmp.gt.s32.totalorder %v1233_v13, 2 }
  0x19   :  { %208 = vmatpush.msra.mxu1 %v70_v19  ;;  %893 = vmatpush.msra.mxu3 %v70_v19 }
  0x1a   :  { %394 = vmatpush.msra.mxu2 %v1145_v8 }
  0x1b   :  { %256 = vmatmul.f32.vlgmr.msrb.gmra.mxu2 %v1057_v20  ;;  %209 = vmatpush.msra.mxu1 %v69_v21 }
  0x1c   :  { %395 = vmatpush.msra.mxu2 %v1151_v10  ;;  %894 = vmatpush.msra.mxu3 %v69_v21 }
  0x1d   :  { %210 = vmatpush.msra.mxu1 %v68_v22 }
  0x1e   :  { %396 = vmatpush.msra.mxu2 %v1157_v12  ;;  %895 = vmatpush.msra.mxu3 %v68_v22 }
  0x20   :  { %856 = vmatmul.msk.f32.gmra.mxu0 %vm93_vm0, %v84_v5  ;;  %397 = vmatpush.msra.mxu2 %v1166_v15  ;;  %v1059_v5 = vmov 0  }
  0x21   :  { %323 = vmatpush.msrb.mxu3 %v1145_v8  ;;  %905 = vset.pattern.permute.xlu1 %v1059_v5 }
  0x22   :  { %536 = vmatpush.msrb.mxu2 %v1145_v8  ;;  %906 = vset.pattern.permute.xlu2 %v1059_v5 }
  0x23   :  { %324 = vmatpush.msrb.mxu3 %v1151_v10  ;;  %907 = vset.pattern.permute.xlu0 %v1059_v5 }
  0x24   :  { %537 = vmatpush.msrb.mxu2 %v1151_v10 }
  0x25   :  { %325 = vmatpush.msrb.mxu3 %v1157_v12 }
  0x26   :  { %538 = vmatpush.msrb.mxu2 %v1157_v12 }
  0x27   :  { %326 = vmatpush.msrb.mxu3 %v1166_v15 }
  0x28   :  { %857 = vmatmul.msk.f32.gmra.mxu0 %vm93_vm0, %v85_v14  ;;  %539 = vmatpush.msrb.mxu2 %v1166_v15  ;;  %v299_v14 = vsel %vm298_vm6, 1, %v1059_v5  ;;  %vm582_vm6 = vcmp.gt.s32.totalorder %v1233_v13, 4 }
  0x30   :  { %858 = vmatmul.msk.f32.gmra.mxu0 %vm93_vm0, %v86_v16 }
  0x38   :  { %859 = vmatmul.msk.f32.gmra.mxu0 %vm93_vm0, %v87_v17 }
  0x40   :  { %860 = vmatmul.msk.f32.gmra.mxu0 %vm93_vm0, %v88_v18 }
  0x8d   :  { %v135_v24 = vpop.f32.mrf.mxu0 }
  0x8e   :  { %v136_v25 = vadd.f32 %v908_v23, %v135_v24 }
  0x90   :  { %v159_v26 = vmax.f32 %v136_v25, 0.0 }
  0x92   :  { %862 = vmatmul.msk.f32.vlgmr.msra.gmra.mxu1 %vm170_vm1, %v159_v26 }
  0x94   :  { %v156_v44 = vpop.f32.mrf.mxu2 }
  0x95   :  { %v138_v27 = vpop.f32.mrf.mxu0  ;;  %v157_v46 = vadd.f32 %v908_v23, %v156_v44 }
  0x96   :  { %v139_v28 = vadd.f32 %v908_v23, %v138_v27 }
  0x97   :  { %v166_v47 = vmax.f32 %v157_v46, 0.0 }
  0x98   :  { %v160_v29 = vmax.f32 %v139_v28, 0.0 }
  0x9a   :  { %863 = vmatmul.msk.f32.gmra.mxu1 %vm170_vm1, %v160_v29 }
  0x9d   :  { %v141_v30 = vpop.f32.mrf.mxu0 }
  0x9e   :  { %v142_v31 = vadd.f32 %v908_v23, %v141_v30  ;;  %v257_v50 = vpop.f32.mrf.mxu2 }
  0xa0   :  { %v161_v32 = vmax.f32 %v142_v31, 0.0  ;;  %v370_v31 = vsel %vm369_vm9, 1, %v1059_v5 }
  0xa2   :  { %864 = vmatmul.msk.f32.gmra.mxu1 %vm170_vm1, %v161_v32 }
  0xa5   :  { %v144_v33 = vpop.f32.mrf.mxu0 }
  0xa6   :  { %v145_v34 = vadd.f32 %v908_v23, %v144_v33 }
  0xa8   :  { %v162_v35 = vmax.f32 %v145_v34, 0.0 }
  0xaa   :  { %865 = vmatmul.msk.f32.gmra.mxu1 %vm170_vm1, %v162_v35 }
  0xad   :  { %v147_v36 = vpop.f32.mrf.mxu0 }
  0xae   :  { %v148_v37 = vadd.f32 %v908_v23, %v147_v36 }
  0xb0   :  { %v163_v38 = vmax.f32 %v148_v37, 0.0 }
  0xb2   :  { %866 = vmatmul.msk.f32.gmra.mxu1 %vm170_vm1, %v163_v38 }
  0xb5   :  { %v150_v39 = vpop.f32.mrf.mxu0 }
  0xb6   :  { %v151_v40 = vadd.f32 %v908_v23, %v150_v39 }
  0xb8   :  { %v164_v41 = vmax.f32 %v151_v40, 0.0 }
  0xba   :  { %867 = vmatmul.msk.f32.gmra.mxu1 %vm170_vm1, %v164_v41 }
  0xbd   :  { %v153_v42 = vpop.f32.mrf.mxu0 }
  0xbe   :  { %v154_v43 = vadd.f32 %v908_v23, %v153_v42 }
  0xc0   :  { %v165_v45 = vmax.f32 %v154_v43, 0.0 }
  0xc2   :  { %868 = vmatmul.msk.f32.vlgmr.msra.gmra.mxu3 %vm170_vm1, %v165_v45 }
  0xc3   :  { %465 = vmatpush.msra.mxu3 %v1145_v8 }
  0xc5   :  { %466 = vmatpush.msra.mxu3 %v1151_v10 }
  0xc7   :  { %467 = vmatpush.msra.mxu3 %v1157_v12 }
  0xc9   :  { %468 = vmatpush.msra.mxu3 %v1166_v15 }
  0xca   :  { %869 = vmatmul.msk.f32.gmra.mxu3 %vm170_vm1, %v166_v47 }
 0x10f   :  { %v212_v49 = vpop.f32.mrf.mxu1 }
 0x110   :  { %v213_v51 = vadd.f32 %v1222_v48, %v212_v49 }
 0x112   :  { %v260_v52 = vadd.f32 %v257_v50, %v213_v51 }
 0x114   :  { %911 = vtanh.f32 %v260_v52  ;;  %v870_v54 = vmul.f32 -1.442695, %v260_v52 }
 0x116   :  { %913 = vpow2.f32 %v870_v54 }
 0x117   :  { %v215_v23 = vpop.f32.mrf.mxu1 }
 0x118   :  { %v216_v24 = vadd.f32 %v1222_v48, %v215_v23 }
 0x11a   :  { %v912_v53 = vpop.eup %911 }
 0x11b   :  { %283 = vrot.lane.b32.xlu0 %v912_v53, %s1058_s10 }
 0x11c   :  { %v914_v55 = vpop.eup %913 }
 0x11d   :  { %v264_v56 = vadd.f32 1.0, %v914_v55 }
 0x11f   :  { %915 = vrcp.f32 %v264_v56  ;;  %v276_v62 = vand.u32 2147483648, %v264_v56  ;;  %vm270_vm3 = vweird.f32 %v264_v56  ;;  %v274_v63 = vand.u32 2147483647, %v264_v56  ;;  %v218_v55 = vpop.f32.mrf.mxu1 }
 0x121   :  { %v277_v1 = vor.u32 1.1754944e-38, %v276_v62  ;;  %vm275_vm5 = vcmp.eq.f32.partialorder %v274_v63, 8.507059e+37 }
 0x125   :  { %v916_v57 = vpop.eup %915 }
 0x126   :  { %v266_v58 = vmul.f32 %v916_v57, %v264_v56  ;;  %vm271_vm2 = vweird.f32 %v916_v57  ;;  %v219_v56 = vadd.f32 %v1222_v48, %v218_v55 }
 0x127   :  { %vm272_vm4 = vmor %vm270_vm3, %vm271_vm2 }
 0x128   :  { %v267_v59 = vsub.f32 1.0, %v266_v58 }
 0x12a   :  { %v268_v60 = vmul.f32 %v916_v57, %v267_v59 }
 0x12c   :  { %v269_v61 = vadd.f32 %v916_v57, %v268_v60  ;;  %v441_v60 = vsel %vm440_vm15, 1, %v1059_v5 }
 0x12e   :  { %v273_v0 = vsel %vm272_vm4, %v916_v57, %v269_v61 }
 0x12f   :  { %v278_v3 = vsel %vm275_vm5, %v277_v1, %v273_v0  ;;  %vm511_vm5 = vcmp.gt.s32.totalorder %v1233_v13, 3 }
 0x130   :  { %v281_v6 = vmul.f32 0.0, %v278_v3 }
 0x145   :  { %v1245_v21 = vpop.f32.mrf.mxu3 }
 0x14d   :  { %v1247_v22 = vpop.f32.mrf.mxu3 }
 0x18d   :  { %v284_v2 = vpop.permute.xlu0 %283 }
 0x18e   :  { %v286_v4 = vmul.f32 %v284_v2, %v278_v3 }
 0x190   :  { %288 = vrot.lane.b32.xlu0 %v286_v4, %s1058_s10 }
 0x202   :  { %v289_v7 = vpop.permute.xlu0 %288 }
 0x203   :  { %v291_v9 = vadd.f32 %v289_v7, %v281_v6 }
 0x205   :  { %917 = vtanh.f32 %v291_v9 }
 0x20b   :  { %v918_v11 = vpop.eup %917 }
 0x20c   :  { %294 = vrot.lane.b32.xlu1 %v918_v11, %s1058_s10 }
 0x214   :  { %301 = vperm.xlu1 %905, %v299_v14  }
 0x27e   :  { %v295_v16 = vpop.permute.xlu1 %294 }
 0x27f   :  { %v297_v17 = vmul.f32 %v295_v16, %v278_v3 }
 0x286   :  { %v302_v18 = vpop.permute.xlu1 %301 }
 0x287   :  { %vm303_vm7 = vcmp.eq.s32.totalorder %v302_v18, 1 }
 0x288   :  { %v304_v19 = vsel %vm303_vm7, %v297_v17, 0.0  ;;  %v305_v44 = vsel %vm303_vm7, %v291_v9, 0.0 }
 0x289   :  { %307 = vrot.lane.b32.xlu2 %v304_v19, %s1060_s12 }
 0x2e3   :  { %v308_v20 = vpop.permute.xlu2 %307 }
 0x2e4   :  { %871 = vmatmul.msk.f32.vlgmr.msrb.gmra.mxu3 %vm236_vm8, %v308_v20 }
 0x2e5   :  { %607 = vmatpush.msrb.mxu3 %v1145_v8 }
 0x2e7   :  { %608 = vmatpush.msrb.mxu3 %v1151_v10 }
 0x2e9   :  { %609 = vmatpush.msrb.mxu3 %v1157_v12 }
 0x2eb   :  { %610 = vmatpush.msrb.mxu3 %v1166_v15 }
 0x367   :  { %v328_v25 = vpop.f32.mrf.mxu3 }
 0x368   :  { %v331_v26 = vadd.f32 %v328_v25, %v216_v24 }
 0x36a   :  { %919 = vtanh.f32 %v331_v26  ;;  %v872_v28 = vmul.f32 -1.442695, %v331_v26 }
 0x36c   :  { %921 = vpow2.f32 %v872_v28 }
 0x370   :  { %v920_v27 = vpop.eup %919 }
 0x371   :  { %354 = vrot.lane.b32.xlu2 %v920_v27, %s1058_s10 }
 0x372   :  { %v922_v29 = vpop.eup %921 }
 0x373   :  { %v335_v30 = vadd.f32 1.0, %v922_v29 }
 0x375   :  { %923 = vrcp.f32 %v335_v30  ;;  %v347_v37 = vand.u32 2147483648, %v335_v30  ;;  %vm341_vm11 = vweird.f32 %v335_v30  ;;  %v345_v38 = vand.u32 2147483647, %v335_v30 }
 0x377   :  { %v348_v40 = vor.u32 1.1754944e-38, %v347_v37  ;;  %vm346_vm13 = vcmp.eq.f32.partialorder %v345_v38, 8.507059e+37 }
 0x379   :  { %372 = vperm.xlu2 %906, %v370_v31  }
 0x37b   :  { %v924_v32 = vpop.eup %923 }
 0x37c   :  { %v337_v33 = vmul.f32 %v924_v32, %v335_v30  ;;  %vm342_vm10 = vweird.f32 %v924_v32  ;;  %v221_v30 = vpop.f32.mrf.mxu1 }
 0x37d   :  { %vm343_vm12 = vmor %vm341_vm11, %vm342_vm10  ;;  %v222_v31 = vadd.f32 %v1222_v48, %v221_v30 }
 0x37e   :  { %v338_v34 = vsub.f32 1.0, %v337_v33 }
 0x380   :  { %v339_v35 = vmul.f32 %v924_v32, %v338_v34 }
 0x382   :  { %v340_v36 = vadd.f32 %v924_v32, %v339_v35 }
 0x384   :  { %v344_v39 = vsel %vm343_vm12, %v924_v32, %v340_v36 }
 0x385   :  { %v349_v42 = vsel %vm346_vm13, %v348_v40, %v344_v39 }
 0x386   :  { %v352_v45 = vmul.f32 %v349_v42, %v305_v44 }
 0x3cb   :  { %v355_v41 = vpop.permute.xlu2 %354 }
 0x3cc   :  { %v357_v43 = vmul.f32 %v355_v41, %v349_v42 }
 0x3ce   :  { %359 = vrot.lane.b32.xlu0 %v357_v43, %s1058_s10 }
 0x3d3   :  { %v373_v50 = vpop.permute.xlu2 %372 }
 0x3d4   :  { %vm374_vm14 = vcmp.eq.s32.totalorder %v373_v50, 1 }
 0x440   :  { %v360_v46 = vpop.permute.xlu0 %359 }
 0x441   :  { %v362_v47 = vadd.f32 %v360_v46, %v352_v45 }
 0x443   :  { %925 = vtanh.f32 %v362_v47  ;;  %v376_v18 = vsel %vm374_vm14, %v362_v47, %v305_v44 }
 0x449   :  { %v926_v49 = vpop.eup %925 }
 0x44a   :  { %365 = vrot.lane.b32.xlu1 %v926_v49, %s1058_s10 }
 0x4bc   :  { %v366_v51 = vpop.permute.xlu1 %365 }
 0x4bd   :  { %v368_v52 = vmul.f32 %v366_v51, %v349_v42 }
 0x4bf   :  { %v375_v53 = vsel %vm374_vm14, %v368_v52, %v304_v19 }
 0x4c0   :  { %378 = vrot.lane.b32.xlu0 %v375_v53, %s1060_s12 }
 0x532   :  { %v379_v54 = vpop.permute.xlu0 %378 }
 0x533   :  { %873 = vmatmul.msk.f32.vlgmr.msra.gmra.mxu2 %vm236_vm8, %v379_v54 }
 0x534   :  { %678 = vmatpush.msra.mxu2 %v1145_v8 }
 0x536   :  { %679 = vmatpush.msra.mxu2 %v1151_v10 }
 0x538   :  { %680 = vmatpush.msra.mxu2 %v1157_v12 }
 0x53a   :  { %681 = vmatpush.msra.mxu2 %v1166_v15 }
 0x5b6   :  { %v399_v57 = vpop.f32.mrf.mxu2 }
 0x5b7   :  { %v402_v58 = vadd.f32 %v399_v57, %v219_v56 }
 0x5b9   :  { %927 = vtanh.f32 %v402_v58  ;;  %v874_v61 = vmul.f32 -1.442695, %v402_v58 }
 0x5bb   :  { %929 = vpow2.f32 %v874_v61 }
 0x5bf   :  { %v928_v59 = vpop.eup %927 }
 0x5c0   :  { %425 = vrot.lane.b32.xlu1 %v928_v59, %s1058_s10  ;;  %v224_v59 = vpop.f32.mrf.mxu1 }
 0x5c1   :  { %v930_v62 = vpop.eup %929 }
 0x5c2   :  { %v406_v63 = vadd.f32 1.0, %v930_v62 }
 0x5c4   :  { %931 = vrcp.f32 %v406_v63  ;;  %v418_v6 = vand.u32 2147483648, %v406_v63  ;;  %vm412_vm1 = vweird.f32 %v406_v63  ;;  %v416_v7 = vand.u32 2147483647, %v406_v63 }
 0x5c6   :  { %v419_v11 = vor.u32 1.1754944e-38, %v418_v6  ;;  %vm417_vm3 = vcmp.eq.f32.partialorder %v416_v7, 8.507059e+37 }
 0x5c8   :  { %443 = vperm.xlu1 %905, %v441_v60   ;;  %v225_v60 = vadd.f32 %v1222_v48, %v224_v59 }
 0x5ca   :  { %v932_v0 = vpop.eup %931 }
 0x5cb   :  { %v408_v1 = vmul.f32 %v932_v0, %v406_v63  ;;  %vm413_vm0 = vweird.f32 %v932_v0 }
 0x5cc   :  { %vm414_vm2 = vmor %vm412_vm1, %vm413_vm0 }
 0x5cd   :  { %v409_v2 = vsub.f32 1.0, %v408_v1 }
 0x5cf   :  { %v410_v3 = vmul.f32 %v932_v0, %v409_v2 }
 0x5d1   :  { %v411_v4 = vadd.f32 %v932_v0, %v410_v3 }
 0x5d3   :  { %v415_v9 = vsel %vm414_vm2, %v932_v0, %v411_v4  ;;  %vm653_vm2 = vcmp.gt.s32.totalorder %v1233_v13, 5 }
 0x5d4   :  { %v420_v16 = vsel %vm417_vm3, %v419_v11, %v415_v9 }
 0x5d5   :  { %v423_v19 = vmul.f32 %v420_v16, %v376_v18 }
 0x632   :  { %v426_v14 = vpop.permute.xlu1 %425 }
 0x633   :  { %v428_v17 = vmul.f32 %v426_v14, %v420_v16 }
 0x635   :  { %430 = vrot.lane.b32.xlu2 %v428_v17, %s1058_s10 }
 0x63a   :  { %v444_v25 = vpop.permute.xlu1 %443 }
 0x63b   :  { %vm445_vm4 = vcmp.eq.s32.totalorder %v444_v25, 1 }
 0x68f   :  { %v431_v20 = vpop.permute.xlu2 %430 }
 0x690   :  { %v433_v23 = vadd.f32 %v431_v20, %v423_v19 }
 0x692   :  { %933 = vtanh.f32 %v433_v23  ;;  %v447_v49 = vsel %vm445_vm4, %v433_v23, %v376_v18 }
 0x698   :  { %v934_v24 = vpop.eup %933 }
 0x699   :  { %436 = vrot.lane.b32.xlu0 %v934_v24, %s1058_s10 }
 0x70b   :  { %v437_v26 = vpop.permute.xlu0 %436 }
 0x70c   :  { %v439_v27 = vmul.f32 %v437_v26, %v420_v16 }
 0x70e   :  { %v446_v28 = vsel %vm445_vm4, %v439_v27, %v375_v53 }
 0x70f   :  { %449 = vrot.lane.b32.xlu2 %v446_v28, %s1060_s12 }
 0x769   :  { %v450_v29 = vpop.permute.xlu2 %449 }
 0x76a   :  { %875 = vmatmul.msk.f32.vlgmr.msra.gmra.mxu3 %vm236_vm8, %v450_v29 }
 0x76b   :  { %749 = vmatpush.msra.mxu3 %v1145_v8  ;;  %v512_v8 = vsel %vm511_vm5, 1, %v1059_v5 }
 0x76d   :  { %750 = vmatpush.msra.mxu3 %v1151_v10  ;;  %v583_v10 = vsel %vm582_vm6, 1, %v1059_v5 }
 0x76f   :  { %751 = vmatpush.msra.mxu3 %v1157_v12 }
 0x771   :  { %752 = vmatpush.msra.mxu3 %v1166_v15 }
 0x7ed   :  { %v470_v32 = vpop.f32.mrf.mxu3 }
 0x7ee   :  { %v473_v33 = vadd.f32 %v470_v32, %v222_v31 }
 0x7f0   :  { %935 = vtanh.f32 %v473_v33  ;;  %v876_v35 = vmul.f32 -1.442695, %v473_v33  ;;  %v227_v33 = vpop.f32.mrf.mxu1 }
 0x7f2   :  { %937 = vpow2.f32 %v876_v35 }
 0x7f6   :  { %v936_v34 = vpop.eup %935 }
 0x7f7   :  { %496 = vrot.lane.b32.xlu0 %v936_v34, %s1058_s10  ;;  %v228_v34 = vadd.f32 %v1222_v48, %v227_v33 }
 0x7f8   :  { %v938_v36 = vpop.eup %937 }
 0x7f9   :  { %v477_v37 = vadd.f32 1.0, %v938_v36 }
 0x7fb   :  { %939 = vrcp.f32 %v477_v37  ;;  %v489_v41 = vand.u32 2147483648, %v477_v37  ;;  %vm483_vm9 = vweird.f32 %v477_v37  ;;  %v487_v42 = vand.u32 2147483647, %v477_v37 }
 0x7fd   :  { %v490_v44 = vor.u32 1.1754944e-38, %v489_v41  ;;  %vm488_vm11 = vcmp.eq.f32.partialorder %v487_v42, 8.507059e+37 }
 0x7ff   :  { %514 = vperm.xlu0 %907, %v512_v8   ;;  %v654_v8 = vsel %vm653_vm2, 1, %v1059_v5 }
 0x801   :  { %v940_v12 = vpop.eup %939 }
 0x802   :  { %v479_v15 = vmul.f32 %v940_v12, %v477_v37  ;;  %vm484_vm7 = vweird.f32 %v940_v12 }
 0x803   :  { %vm485_vm10 = vmor %vm483_vm9, %vm484_vm7  ;;  %vm724_vm9 = vcmp.gt.s32.totalorder %v1233_v13, 6 }
 0x804   :  { %v480_v38 = vsub.f32 1.0, %v479_v15 }
 0x806   :  { %v481_v39 = vmul.f32 %v940_v12, %v480_v38 }
 0x807   :  { %585 = vperm.xlu0 %907, %v583_v10  }
 0x808   :  { %v482_v40 = vadd.f32 %v940_v12, %v481_v39 }
 0x80a   :  { %v486_v43 = vsel %vm485_vm10, %v940_v12, %v482_v40 }
 0x80b   :  { %v491_v46 = vsel %vm488_vm11, %v490_v44, %v486_v43 }
 0x80c   :  { %v494_v50 = vmul.f32 %v491_v46, %v447_v49 }
 0x869   :  { %v497_v45 = vpop.permute.xlu0 %496 }
 0x86a   :  { %v499_v47 = vmul.f32 %v497_v45, %v491_v46 }
 0x86c   :  { %501 = vrot.lane.b32.xlu1 %v499_v47, %s1058_s10 }
 0x871   :  { %v515_v54 = vpop.permute.xlu0 %514 }
 0x872   :  { %vm516_vm12 = vcmp.eq.s32.totalorder %v515_v54, 1 }
 0x8de   :  { %v502_v51 = vpop.permute.xlu1 %501 }
 0x8df   :  { %v504_v52 = vadd.f32 %v502_v51, %v494_v50 }
 0x8e1   :  { %941 = vtanh.f32 %v504_v52  ;;  %v518_v23 = vsel %vm516_vm12, %v504_v52, %v447_v49 }
 0x8e7   :  { %v942_v53 = vpop.eup %941 }
 0x8e8   :  { %507 = vrot.lane.b32.xlu2 %v942_v53, %s1058_s10 }
 0x942   :  { %v508_v55 = vpop.permute.xlu2 %507 }
 0x943   :  { %v510_v56 = vmul.f32 %v508_v55, %v491_v46 }
 0x945   :  { %v517_v57 = vsel %vm516_vm12, %v510_v56, %v446_v28  ;;  %v586_v28 = vpop.permute.xlu0 %585 }
 0x946   :  { %520 = vrot.lane.b32.xlu1 %v517_v57, %s1060_s12  ;;  %vm587_vm1 = vcmp.eq.s32.totalorder %v586_v28, 1 }
 0x9b8   :  { %v521_v58 = vpop.permute.xlu1 %520 }
 0x9b9   :  { %877 = vmatmul.msk.f32.vlgmr.msrb.gmra.mxu2 %vm236_vm8, %v521_v58 }
 0xa3c   :  { %v541_v61 = vpop.f32.mrf.mxu2 }
 0xa3d   :  { %v544_v62 = vadd.f32 %v541_v61, %v225_v60  ;;  %v231_v61 = vadd.f32 %v1222_v48, %v1245_v21 }
 0xa3f   :  { %943 = vtanh.f32 %v544_v62  ;;  %v878_v0 = vmul.f32 -1.442695, %v544_v62 }
 0xa41   :  { %945 = vpow2.f32 %v878_v0 }
 0xa45   :  { %v944_v63 = vpop.eup %943 }
 0xa46   :  { %567 = vrot.lane.b32.xlu2 %v944_v63, %s1058_s10 }
 0xa47   :  { %v946_v1 = vpop.eup %945 }
 0xa48   :  { %v548_v2 = vadd.f32 1.0, %v946_v1  ;;  %v725_v1 = vsel %vm724_vm9, 1, %v1059_v5 }
 0xa4a   :  { %947 = vrcp.f32 %v548_v2  ;;  %v560_v11 = vand.u32 2147483648, %v548_v2  ;;  %vm554_vm14 = vweird.f32 %v548_v2  ;;  %v558_v14 = vand.u32 2147483647, %v548_v2 }
 0xa4c   :  { %v561_v17 = vor.u32 1.1754944e-38, %v560_v11  ;;  %vm559_vm0 = vcmp.eq.f32.partialorder %v558_v14, 8.507059e+37 }
 0xa50   :  { %v948_v3 = vpop.eup %947 }
 0xa51   :  { %v550_v4 = vmul.f32 %v948_v3, %v548_v2  ;;  %vm555_vm13 = vweird.f32 %v948_v3 }
 0xa52   :  { %vm556_vm15 = vmor %vm554_vm14, %vm555_vm13 }
 0xa53   :  { %v551_v6 = vsub.f32 1.0, %v550_v4 }
 0xa55   :  { %v552_v7 = vmul.f32 %v948_v3, %v551_v6 }
 0xa57   :  { %v553_v9 = vadd.f32 %v948_v3, %v552_v7 }
 0xa59   :  { %v557_v16 = vsel %vm556_vm15, %v948_v3, %v553_v9  ;;  %vm795_vm15 = vcmp.gt.s32.totalorder %v1233_v13, 7 }
 0xa5a   :  { %v562_v19 = vsel %vm559_vm0, %v561_v17, %v557_v16 }
 0xa5b   :  { %v565_v24 = vmul.f32 %v562_v19, %v518_v23 }
 0xaa0   :  { %v568_v18 = vpop.permute.xlu2 %567 }
 0xaa1   :  { %v570_v20 = vmul.f32 %v568_v18, %v562_v19 }
 0xaa3   :  { %572 = vrot.lane.b32.xlu1 %v570_v20, %s1058_s10 }
 0xb15   :  { %v573_v25 = vpop.permute.xlu1 %572 }
 0xb16   :  { %v575_v26 = vadd.f32 %v573_v25, %v565_v24 }
 0xb18   :  { %949 = vtanh.f32 %v575_v26  ;;  %v589_v51 = vsel %vm587_vm1, %v575_v26, %v518_v23 }
 0xb1e   :  { %v950_v27 = vpop.eup %949 }
 0xb1f   :  { %578 = vrot.lane.b32.xlu2 %v950_v27, %s1058_s10 }
 0xb79   :  { %v579_v29 = vpop.permute.xlu2 %578 }
 0xb7a   :  { %v581_v30 = vmul.f32 %v579_v29, %v562_v19 }
 0xb7c   :  { %v588_v31 = vsel %vm587_vm1, %v581_v30, %v517_v57 }
 0xb7d   :  { %591 = vrot.lane.b32.xlu1 %v588_v31, %s1060_s12 }
 0xbef   :  { %v592_v32 = vpop.permute.xlu1 %591 }
 0xbf0   :  { %879 = vmatmul.msk.f32.vlgmr.msrb.gmra.mxu3 %vm236_vm8, %v592_v32 }
 0xc73   :  { %v612_v35 = vpop.f32.mrf.mxu3 }
 0xc74   :  { %v615_v36 = vadd.f32 %v612_v35, %v228_v34  ;;  %v234_v34 = vadd.f32 %v1222_v48, %v1247_v22 }
 0xc76   :  { %951 = vtanh.f32 %v615_v36  ;;  %v880_v10 = vmul.f32 -1.442695, %v615_v36 }
 0xc78   :  { %953 = vpow2.f32 %v880_v10 }
 0xc7c   :  { %v952_v37 = vpop.eup %951 }
 0xc7d   :  { %638 = vrot.lane.b32.xlu2 %v952_v37, %s1058_s10 }
 0xc7e   :  { %v954_v12 = vpop.eup %953 }
 0xc7f   :  { %v619_v15 = vadd.f32 1.0, %v954_v12 }
 0xc81   :  { %955 = vrcp.f32 %v619_v15  ;;  %v631_v43 = vand.u32 2147483648, %v619_v15  ;;  %vm625_vm4 = vweird.f32 %v619_v15  ;;  %v629_v44 = vand.u32 2147483647, %v619_v15 }
 0xc83   :  { %v632_v46 = vor.u32 1.1754944e-38, %v631_v43  ;;  %vm630_vm6 = vcmp.eq.f32.partialorder %v629_v44, 8.507059e+37 }
 0xc85   :  { %656 = vperm.xlu2 %906, %v654_v8   ;;  %v796_v8 = vsel %vm795_vm15, 1, %v1059_v5 }
 0xc87   :  { %v956_v38 = vpop.eup %955 }
 0xc88   :  { %v621_v39 = vmul.f32 %v956_v38, %v619_v15  ;;  %vm626_vm3 = vweird.f32 %v956_v38 }
 0xc89   :  { %vm627_vm5 = vmor %vm625_vm4, %vm626_vm3 }
 0xc8a   :  { %v622_v40 = vsub.f32 1.0, %v621_v39 }
 0xc8c   :  { %v623_v41 = vmul.f32 %v956_v38, %v622_v40 }
 0xc8e   :  { %v624_v42 = vadd.f32 %v956_v38, %v623_v41 }
 0xc90   :  { %v628_v45 = vsel %vm627_vm5, %v956_v38, %v624_v42 }
 0xc91   :  { %v633_v49 = vsel %vm630_vm6, %v632_v46, %v628_v45 }
 0xc92   :  { %v636_v52 = vmul.f32 %v633_v49, %v589_v51 }
 0xcd7   :  { %v639_v47 = vpop.permute.xlu2 %638 }
 0xcd8   :  { %v641_v50 = vmul.f32 %v639_v47, %v633_v49 }
 0xcda   :  { %643 = vrot.lane.b32.xlu0 %v641_v50, %s1058_s10 }
 0xcdf   :  { %v657_v56 = vpop.permute.xlu2 %656 }
 0xce0   :  { %vm658_vm7 = vcmp.eq.s32.totalorder %v657_v56, 1 }
 0xd4c   :  { %v644_v53 = vpop.permute.xlu0 %643 }
 0xd4d   :  { %v646_v54 = vadd.f32 %v644_v53, %v636_v52  ;;  %v805_v52 = vld [vmem:[#allocation5 + $0x18] sm:$0xff]  ;;  %v804_v53 = vld [vmem:[#allocation5 + $0x10] sm:$0xff] }
 0xd4e   :  { %827 = vmatpush.msrb.mxu2 %v805_v52 }
 0xd4f   :  { %957 = vtanh.f32 %v646_v54  ;;  %v660_v24 = vsel %vm658_vm7, %v646_v54, %v589_v51  ;;  %v803_v54 = vld [vmem:[#allocation5 + $0x8] sm:$0xff] }
 0xd50   :  { %828 = vmatpush.msrb.mxu2 %v804_v53 }
 0xd52   :  { %829 = vmatpush.msrb.mxu2 %v803_v54 }
 0xd55   :  { %v958_v55 = vpop.eup %957 }
 0xd56   :  { %649 = vrot.lane.b32.xlu1 %v958_v55, %s1058_s10  ;;  %v802_v55 = vld [vmem:[#allocation5] sm:$0xff] }
 0xd57   :  { %830 = vmatpush.msrb.mxu2 %v802_v55 }
 0xdc8   :  { %v650_v57 = vpop.permute.xlu1 %649 }
 0xdc9   :  { %v652_v58 = vmul.f32 %v650_v57, %v633_v49 }
 0xdcb   :  { %v659_v59 = vsel %vm658_vm7, %v652_v58, %v588_v31 }
 0xdcc   :  { %662 = vrot.lane.b32.xlu0 %v659_v59, %s1060_s12 }
 0xe3e   :  { %v663_v60 = vpop.permute.xlu0 %662 }
 0xe3f   :  { %881 = vmatmul.msk.f32.vlgmr.msra.gmra.mxu2 %vm236_vm8, %v663_v60 }
 0xec2   :  { %v683_v62 = vpop.f32.mrf.mxu2 }
 0xec3   :  { %v686_v63 = vadd.f32 %v683_v62, %v231_v61  ;;  %v910_v61 = vld [vmem:[%s1342_s8] ss:$0 sm:$0xff] }
 0xec5   :  { %959 = vtanh.f32 %v686_v63  ;;  %v882_v2 = vmul.f32 -1.442695, %v686_v63 }
 0xec7   :  { %961 = vpow2.f32 %v882_v2 }
 0xecb   :  { %v960_v0 = vpop.eup %959 }
 0xecc   :  { %709 = vrot.lane.b32.xlu1 %v960_v0, %s1058_s10 }
 0xecd   :  { %v962_v3 = vpop.eup %961 }
 0xece   :  { %v690_v4 = vadd.f32 1.0, %v962_v3 }
 0xed0   :  { %963 = vrcp.f32 %v690_v4  ;;  %v702_v14 = vand.u32 2147483648, %v690_v4  ;;  %vm696_vm11 = vweird.f32 %v690_v4  ;;  %v700_v16 = vand.u32 2147483647, %v690_v4 }
 0xed2   :  { %v703_v18 = vor.u32 1.1754944e-38, %v702_v14  ;;  %vm701_vm13 = vcmp.eq.f32.partialorder %v700_v16, 8.507059e+37 }
 0xed4   :  { %727 = vperm.xlu1 %905, %v725_v1  }
 0xed6   :  { %v964_v6 = vpop.eup %963 }
 0xed7   :  { %v692_v7 = vmul.f32 %v964_v6, %v690_v4  ;;  %vm697_vm10 = vweird.f32 %v964_v6 }
 0xed8   :  { %vm698_vm12 = vmor %vm696_vm11, %vm697_vm10 }
 0xed9   :  { %v693_v9 = vsub.f32 1.0, %v692_v7 }
 0xedb   :  { %v694_v21 = vmul.f32 %v964_v6, %v693_v9 }
 0xedd   :  { %v695_v11 = vadd.f32 %v964_v6, %v694_v21 }
 0xedf   :  { %v699_v17 = vsel %vm698_vm12, %v964_v6, %v695_v11 }
 0xee0   :  { %v704_v20 = vsel %vm701_vm13, %v703_v18, %v699_v17 }
 0xee1   :  { %v707_v25 = vmul.f32 %v704_v20, %v660_v24 }
 0xf3e   :  { %v710_v19 = vpop.permute.xlu1 %709 }
 0xf3f   :  { %v712_v23 = vmul.f32 %v710_v19, %v704_v20 }
 0xf41   :  { %714 = vrot.lane.b32.xlu2 %v712_v23, %s1058_s10 }
 0xf46   :  { %v728_v29 = vpop.permute.xlu1 %727 }
 0xf47   :  { %vm729_vm14 = vcmp.eq.s32.totalorder %v728_v29, 1 }
 0xf9b   :  { %v715_v26 = vpop.permute.xlu2 %714 }
 0xf9c   :  { %v717_v27 = vadd.f32 %v715_v26, %v707_v25 }
 0xf9e   :  { %965 = vtanh.f32 %v717_v27  ;;  %v731_v46 = vsel %vm729_vm14, %v717_v27, %v660_v24 }
 0xfa4   :  { %v966_v28 = vpop.eup %965 }
 0xfa5   :  { %720 = vrot.lane.b32.xlu0 %v966_v28, %s1058_s10 }
0x1017   :  { %v721_v30 = vpop.permute.xlu0 %720 }
0x1018   :  { %v723_v31 = vmul.f32 %v721_v30, %v704_v20 }
0x101a   :  { %v730_v32 = vsel %vm729_vm14, %v723_v31, %v659_v59 }
0x101b   :  { %733 = vrot.lane.b32.xlu2 %v730_v32, %s1060_s12 }
0x1075   :  { %v734_v33 = vpop.permute.xlu2 %733 }
0x1076   :  { %883 = vmatmul.msk.f32.vlgmr.msra.gmra.mxu3 %vm236_vm8, %v734_v33 }
0x10f9   :  { %v754_v35 = vpop.f32.mrf.mxu3 }
0x10fa   :  { %v757_v36 = vadd.f32 %v754_v35, %v234_v34 }
0x10fc   :  { %967 = vtanh.f32 %v757_v36  ;;  %v884_v10 = vmul.f32 -1.442695, %v757_v36 }
0x10fe   :  { %969 = vpow2.f32 %v884_v10 }
0x1102   :  { %v968_v37 = vpop.eup %967 }
0x1103   :  { %780 = vrot.lane.b32.xlu0 %v968_v37, %s1058_s10 }
0x1104   :  { %v970_v12 = vpop.eup %969 }
0x1105   :  { %v761_v15 = vadd.f32 1.0, %v970_v12 }
0x1107   :  { %971 = vrcp.f32 %v761_v15  ;;  %v773_v41 = vand.u32 2147483648, %v761_v15  ;;  %vm767_vm1 = vweird.f32 %v761_v15  ;;  %v771_v42 = vand.u32 2147483647, %v761_v15 }
0x1109   :  { %v774_v13 = vor.u32 1.1754944e-38, %v773_v41  ;;  %vm772_vm3 = vcmp.eq.f32.partialorder %v771_v42, 8.507059e+37 }
0x110b   :  { %798 = vperm.xlu0 %907, %v796_v8  }
0x110d   :  { %v972_v38 = vpop.eup %971 }
0x110e   :  { %v763_v39 = vmul.f32 %v972_v38, %v761_v15  ;;  %vm768_vm0 = vweird.f32 %v972_v38 }
0x110f   :  { %vm769_vm2 = vmor %vm767_vm1, %vm768_vm0 }
0x1110   :  { %v764_v40 = vsub.f32 1.0, %v763_v39 }
0x1112   :  { %v765_v48 = vmul.f32 %v972_v38, %v764_v40 }
0x1114   :  { %v766_v22 = vadd.f32 %v972_v38, %v765_v48 }
0x1116   :  { %v770_v43 = vsel %vm769_vm2, %v972_v38, %v766_v22 }
0x1117   :  { %v775_v44 = vsel %vm772_vm3, %v774_v13, %v770_v43 }
0x1118   :  { %v778_v47 = vmul.f32 %v775_v44, %v731_v46 }
0x1175   :  { %v781_v5 = vpop.permute.xlu0 %780 }
0x1176   :  { %v783_v45 = vmul.f32 %v781_v5, %v775_v44 }
0x1178   :  { %785 = vrot.lane.b32.xlu1 %v783_v45, %s1058_s10 }
0x117d   :  { %v799_v56 = vpop.permute.xlu0 %798 }
0x117e   :  { %vm800_vm4 = vcmp.eq.s32.totalorder %v799_v56, 1 }
0x11ea   :  { %v786_v49 = vpop.permute.xlu1 %785 }
0x11eb   :  { %v788_v50 = vadd.f32 %v786_v49, %v778_v47 }
0x11ed   :  { %973 = vtanh.f32 %v788_v50 }
0x11f3   :  { %v974_v51 = vpop.eup %973 }
0x11f4   :  { %791 = vrot.lane.b32.xlu2 %v974_v51, %s1058_s10 }
0x124e   :  { %v792_v57 = vpop.permute.xlu2 %791 }
0x124f   :  { %v794_v58 = vmul.f32 %v792_v57, %v775_v44 }
0x1251   :  { %v801_v59 = vsel %vm800_vm4, %v794_v58, %v730_v32 }
0x1252   :  { %811 = vrot.lane.b32.xlu1 %v801_v59, %s1060_s12 }
0x12c4   :  { %v812_v60 = vpop.permute.xlu1 %811 }
0x12c5   :  { %885 = vmatmul.msk.f32.vlgmr.msrb.gmra.mxu2 %vm236_vm8, %v812_v60 }
0x1348   :  { %v832_v62 = vpop.f32.mrf.mxu2 }
0x1349   :  { %v833_v63 = vadd.f32 %v910_v61, %v832_v62 }
0x134b   :  { %835 = vst [vmem:[#allocation7] sm:$0xff] %v833_v63 }
0x134c   :  { %846 = dma.vmem_to_hbm [thread:$0]  %s842_s15, 128, %s844_s18, [#allocation4]  }
0x134d   :  { %1051 = dma.done.wait [#allocation4], 128  }
0x134e   :  { %1052 = vsyncadd [#allocation4], 4294967168 }
0x134f   :  { %851 = vsyncpa [#allocation3], 1 }
0x1350   :  { %852 = vsyncpa [#allocation6], 1 }
0x1351   :  { %853 = vsyncpa [#allocation4], 1 }

</bundles_post_ra>
